<compile_context>
chip_gen: v5e
topology: v5e:2x2
jax: 0.10.0
libtpu: 0.0.40
codegen_flags: <defaults>
</compile_context>

<pallas_src>
import functools

import jax
import jax.numpy as jnp
from jax.experimental import pallas as pl
from jax.experimental.pallas import tpu as pltpu

LANE = 128  # one vreg-lane-aligned block per gate


def lstm_tagger_kernel(ids_ref, gates_slab_ref, tag_slab_ref, out_ref,
                       *, seq_len, vocab_pad, lane_pad):
    """Fused gate-table lookup + LSTM recurrence + tag projection + log_softmax.

    gates_slab_ref : (vocab_pad + P, 4P) f32
        rows [0, vocab_pad)        = per-token gate contributions (bias folded in)
        rows [vocab_pad, +P)       = W_hh, lane-aligned per gate
    tag_slab_ref   : (P + 8, P) f32
        rows [0, P)  = W_tag (padded lanes zero)
        row  P       = tag bias (-1e30 in padded lanes; f32 only -- would be
                       -inf if this path is ever lowered to bf16)
    Gate lane order: [i, f, o, g]; padded lanes of gates stay exactly 0, so
    padded lanes of h/c stay exactly 0 through the recurrence.
    """
    T, VP, P = seq_len, vocab_pad, lane_pad
    P3 = 3 * P

    # Hoisted per-token gate rows: T dynamic-row loads, independent of the
    # recurrence, issued up front.  Token ids must be < vocab (no OOB check).
    gx = [gates_slab_ref[pl.ds(ids_ref[t], 1), :] for t in range(T)]   # T x (1, 4P)
    w_hh = gates_slab_ref[VP:VP + P, :]                                # (P, 4P), static 8-aligned slice

    h = jnp.zeros((1, P), jnp.float32)
    c = jnp.zeros((1, P), jnp.float32)
    hs = []
    # Fully unrolled recurrence (static T): only h @ W_hh + gate math per step.
    for t in range(T):
        gates = gx[t] + jnp.dot(h, w_hh, preferred_element_type=jnp.float32)  # (1, 4P)
        sig = jax.nn.sigmoid(gates[:, :P3])    # i | f | o in ONE EUP pass
        g_g = jnp.tanh(gates[:, P3:])          # g in one EUP pass
        c = sig[:, P:2 * P] * c + sig[:, 0:P] * g_g
        h = sig[:, 2 * P:P3] * jnp.tanh(c)
        hs.append(h)
    h_all = jnp.concatenate(hs, axis=0)        # (T, P), kept in vregs (no scratch)

    # Hoisted tag projection + log_softmax, single lane-dense (T, 128) store.
    w_tag = tag_slab_ref[0:P, :]               # (P, P)
    b_tag = tag_slab_ref[P:P + 1, :]           # (1, P)
    tag = jnp.dot(h_all, w_tag, preferred_element_type=jnp.float32) + b_tag
    m = jnp.max(tag, axis=-1, keepdims=True)
    lse = m + jnp.log(jnp.sum(jnp.exp(tag - m), axis=-1, keepdims=True))
    out_ref[...] = tag - lse


def pack_lstm_tagger_weights(emb_weight, w_ih, w_hh, b_ih, b_hh, w_tag, b_tag):
    """One-time weight packing (hoisted out of the per-call path).

    Returns (gates_slab, tag_slab) f32 slabs consumed by the kernel.
    PyTorch shapes in: emb (V,E), w_ih (4H,E), w_hh (4H,H), b_* (4H,),
    w_tag (TS,H), b_tag (TS,).
    """
    P = LANE
    V, E = emb_weight.shape
    H = w_hh.shape[1]
    TS = w_tag.shape[0]
    f32 = jnp.float32
    order = jnp.array([0, 1, 3, 2])  # PyTorch [i,f,g,o] -> lane order [i,f,o,g]

    # W_ih, lane-aligned per gate: (E, 4P)
    w_ih_g = w_ih.astype(f32).reshape(4, H, E)[order]                   # (4, H, E)
    w_ih_pad = jnp.pad(jnp.transpose(w_ih_g, (0, 2, 1)),                # (4, E, H)
                       ((0, 0), (0, 0), (0, P - H)))                    # (4, E, P)
    w_ih_pad = jnp.transpose(w_ih_pad, (1, 0, 2)).reshape(E, 4 * P)

    # W_hh, lane-aligned per gate: (P, 4P)
    w_hh_g = w_hh.astype(f32).reshape(4, H, H)[order]                   # (4, Hout, Hin)
    w_hh_pad = jnp.pad(jnp.transpose(w_hh_g, (0, 2, 1)),                # (4, Hin, Hout)
                       ((0, 0), (0, P - H), (0, P - H)))                # (4, P, P)
    w_hh_pad = jnp.transpose(w_hh_pad, (1, 0, 2)).reshape(P, 4 * P)

    # Combined bias (b_ih + b_hh), lane-aligned: (1, 4P)
    b = (b_ih + b_hh).astype(f32).reshape(4, H)[order]
    b_pad = jnp.pad(b, ((0, 0), (0, P - H))).reshape(1, 4 * P)

    # Precomputed per-token gate contributions (bias folded in): (V_pad, 4P)
    table = emb_weight.astype(f32) @ w_ih_pad + b_pad
    v_pad = ((V + 7) // 8) * 8
    table = jnp.pad(table, ((0, v_pad - V), (0, 0)))
    gates_slab = jnp.concatenate([table, w_hh_pad], axis=0)             # (V_pad + P, 4P)

    # Tag projection slab: W_tag (P,P) ‖ bias row ‖ zero pad to 8-multiple rows.
    w_tag_pad = jnp.pad(w_tag.astype(f32).T, ((0, P - H), (0, P - TS)))  # (P, P)
    b_tag_pad = jnp.full((1, P), -1e30, f32).at[0, :TS].set(b_tag.astype(f32))
    tag_slab = jnp.concatenate(
        [w_tag_pad, b_tag_pad, jnp.zeros((7, P), f32)], axis=0)         # (P + 8, P)

    return gates_slab, tag_slab


@functools.partial(jax.jit, static_argnums=(3,))
def lstm_tagger_forward(token_ids, gates_slab, tag_slab, tagset_size):
    """token_ids: (T,) int32.  Returns (T, tagset_size) log-probs."""
    T = int(token_ids.shape[0])
    P = LANE
    v_pad = int(gates_slab.shape[0]) - P

    kernel = functools.partial(lstm_tagger_kernel,
                               seq_len=T, vocab_pad=v_pad, lane_pad=P)

    out_pad = pl.pallas_call(
        kernel,
        out_shape=jax.ShapeDtypeStruct((T, P), jnp.float32),            # lane-dense out
        in_specs=[pl.BlockSpec(memory_space=pltpu.MemorySpace.SMEM),    # token ids
                  pl.BlockSpec(memory_space=pltpu.MemorySpace.VMEM),    # gate table ‖ W_hh
                  pl.BlockSpec(memory_space=pltpu.MemorySpace.VMEM)],   # W_tag ‖ b_tag
        out_specs=pl.BlockSpec(memory_space=pltpu.MemorySpace.VMEM),
    )(token_ids.astype(jnp.int32), gates_slab, tag_slab)

    return out_pad[:, :tagset_size]


def reference_forward(token_ids, emb_weight, w_ih, w_hh, b_ih, b_hh, w_tag, b_tag):
    """Pure-JAX reference matching PyTorch LSTMTagger.forward semantics."""
    H = w_hh.shape[1]
    x = emb_weight[token_ids]                                           # (T, E)
    h = jnp.zeros((1, H), jnp.float32)
    c = jnp.zeros((1, H), jnp.float32)
    bias = (b_ih + b_hh)[None, :]
    hs = []
    for t in range(x.shape[0]):
        gates = x[t:t + 1] @ w_ih.T + h @ w_hh.T + bias
        i = jax.nn.sigmoid(gates[:, 0:H])
        f = jax.nn.sigmoid(gates[:, H:2 * H])
        g = jnp.tanh(gates[:, 2 * H:3 * H])
        o = jax.nn.sigmoid(gates[:, 3 * H:4 * H])
        c = f * c + i * g
        h = o * jnp.tanh(c)
        hs.append(h)
    hh = jnp.concatenate(hs, axis=0)
    tag = hh @ w_tag.T + b_tag[None, :]
    return jax.nn.log_softmax(tag, axis=-1)


def prepare_sequence(seq, to_ix):
    return jnp.asarray([to_ix[w] for w in seq], dtype=jnp.int32)


if __name__ == "__main__":
    # --- data, exactly as in the reference script ---
    training_data = [
        ("The dog ate the apple".split(), ["DET", "NN", "V", "DET", "NN"]),
        ("Everybody read that book".split(), ["NN", "V", "DET", "NN"]),
    ]
    word_to_ix = {}
    for sent, _tags in training_data:
        for w in sent:
            if w not in word_to_ix:
                word_to_ix[w] = len(word_to_ix)
    tag_to_ix = {"DET": 0, "NN": 1, "V": 2}

    EMBEDDING_DIM = 6
    HIDDEN_DIM = 6
    VOCAB_SIZE = len(word_to_ix)     # 9
    TAGSET_SIZE = len(tag_to_ix)     # 3

    # --- deterministic parameter init (PyTorch-style distributions) ---
    key = jax.random.PRNGKey(0)
    k_emb, k_wih, k_whh, k_bih, k_bhh, k_wt, k_bt = jax.random.split(key, 7)

    emb_weight = jax.random.normal(k_emb, (VOCAB_SIZE, EMBEDDING_DIM), jnp.float32)

    s = 1.0 / jnp.sqrt(HIDDEN_DIM)
    w_ih = jax.random.uniform(k_wih, (4 * HIDDEN_DIM, EMBEDDING_DIM), jnp.float32, -s, s)
    w_hh = jax.random.uniform(k_whh, (4 * HIDDEN_DIM, HIDDEN_DIM), jnp.float32, -s, s)
    b_ih = jax.random.uniform(k_bih, (4 * HIDDEN_DIM,), jnp.float32, -s, s)
    b_hh = jax.random.uniform(k_bhh, (4 * HIDDEN_DIM,), jnp.float32, -s, s)

    sl = 1.0 / jnp.sqrt(HIDDEN_DIM)
    w_tag = jax.random.uniform(k_wt, (TAGSET_SIZE, HIDDEN_DIM), jnp.float32, -sl, sl)
    b_tag = jax.random.uniform(k_bt, (TAGSET_SIZE,), jnp.float32, -sl, sl)

    # --- one-time weight packing (hoisted out of the per-call path) ---
    gates_slab, tag_slab = pack_lstm_tagger_weights(
        emb_weight, w_ih, w_hh, b_ih, b_hh, w_tag, b_tag)
    gates_slab, tag_slab = jax.block_until_ready((gates_slab, tag_slab))

    # --- forward: model(prepare_sequence(training_data[1][0], word_to_ix)) ---
    inputs = prepare_sequence(training_data[1][0], word_to_ix)   # (4,) int32

    tag_scores = lstm_tagger_forward(inputs, gates_slab, tag_slab, TAGSET_SIZE)
    tag_scores = jax.block_until_ready(tag_scores)

    # sanity 1: shape + rows of log_softmax output sum to 1 in prob space
    assert tag_scores.shape == (int(inputs.shape[0]), TAGSET_SIZE)
    row_sums = jnp.exp(tag_scores).sum(axis=-1)
    assert bool(jnp.all(jnp.abs(row_sums - 1.0) < 1e-4))

    # sanity 2: match the pure-JAX reference of the PyTorch module
    ref = reference_forward(inputs, emb_weight, w_ih, w_hh, b_ih, b_hh, w_tag, b_tag)
    assert bool(jnp.max(jnp.abs(tag_scores - ref)) < 1e-4)

    print("KERNEL_OK")
</pallas_src>

<mosaic_0001>
module attributes {stable_mosaic.version = 11 : i64} {
  func.func @lstm_tagger_kernel(%arg0: memref<4xi32, #tpu.memory_space<smem>>, %arg1: memref<144x512xf32, #tpu.memory_space<vmem>>, %arg2: memref<136x128xf32, #tpu.memory_space<vmem>>, %arg3: memref<4x128xf32, #tpu.memory_space<vmem>>) attributes {dimension_semantics = [], scalar_prefetch = 0 : i64, scratch_operands = 0 : i64, tpu.core_type = #tpu.core_type<tc>} {
    %c0 = arith.constant 0 : index
    %0 = memref.load %arg0[%c0] : memref<4xi32, #tpu.memory_space<smem>>
    %1 = arith.index_cast %0 : i32 to index
    %c0_0 = arith.constant 0 : index
    %2 = vector.load %arg1[%1, %c0_0] : memref<144x512xf32, #tpu.memory_space<vmem>>, vector<1x512xf32>
    %c1 = arith.constant 1 : index
    %3 = memref.load %arg0[%c1] : memref<4xi32, #tpu.memory_space<smem>>
    %4 = arith.index_cast %3 : i32 to index
    %c0_1 = arith.constant 0 : index
    %5 = vector.load %arg1[%4, %c0_1] : memref<144x512xf32, #tpu.memory_space<vmem>>, vector<1x512xf32>
    %c2 = arith.constant 2 : index
    %6 = memref.load %arg0[%c2] : memref<4xi32, #tpu.memory_space<smem>>
    %7 = arith.index_cast %6 : i32 to index
    %c0_2 = arith.constant 0 : index
    %8 = vector.load %arg1[%7, %c0_2] : memref<144x512xf32, #tpu.memory_space<vmem>>, vector<1x512xf32>
    %c3 = arith.constant 3 : index
    %9 = memref.load %arg0[%c3] : memref<4xi32, #tpu.memory_space<smem>>
    %10 = arith.index_cast %9 : i32 to index
    %c0_3 = arith.constant 0 : index
    %11 = vector.load %arg1[%10, %c0_3] : memref<144x512xf32, #tpu.memory_space<vmem>>, vector<1x512xf32>
    %c16 = arith.constant 16 : index
    %c0_4 = arith.constant 0 : index
    %12 = vector.load %arg1[%c16, %c0_4] : memref<144x512xf32, #tpu.memory_space<vmem>>, vector<128x512xf32>
    %cst = arith.constant 0.000000e+00 : f32
    %13 = vector.broadcast %cst : f32 to vector<1x128xf32>
    %cst_5 = arith.constant 0.000000e+00 : f32
    %14 = vector.broadcast %cst_5 : f32 to vector<1x128xf32>
    %cst_6 = arith.constant dense<0.000000e+00> : vector<1x512xf32>
    %15 = tpu.matmul %13, %12, %cst_6 {dimension_numbers = #tpu.dot_dimension_numbers<[1], [0], [0], [1], [0, 0, 1, 1], [], []>} : vector<1x128xf32>, vector<128x512xf32>, vector<1x512xf32> -> vector<1x512xf32>
    %16 = arith.addf %2, %15 : vector<1x512xf32>
    %17 = vector.extract_strided_slice %16 {offsets = [0, 0], sizes = [1, 384], strides = [1, 1]} : vector<1x512xf32> to vector<1x384xf32>
    %18 = arith.negf %17 : vector<1x384xf32>
    %19 = math.exp %18 : vector<1x384xf32>
    %cst_7 = arith.constant 1.000000e+00 : f32
    %20 = vector.broadcast %cst_7 : f32 to vector<1x384xf32>
    %21 = arith.addf %20, %19 : vector<1x384xf32>
    %22 = arith.divf %20, %21 : vector<1x384xf32>
    %23 = vector.extract_strided_slice %16 {offsets = [0, 384], sizes = [1, 128], strides = [1, 1]} : vector<1x512xf32> to vector<1x128xf32>
    %24 = math.tanh %23 : vector<1x128xf32>
    %25 = vector.extract_strided_slice %22 {offsets = [0, 128], sizes = [1, 128], strides = [1, 1]} : vector<1x384xf32> to vector<1x128xf32>
    %26 = arith.mulf %25, %14 : vector<1x128xf32>
    %27 = vector.extract_strided_slice %22 {offsets = [0, 0], sizes = [1, 128], strides = [1, 1]} : vector<1x384xf32> to vector<1x128xf32>
    %28 = arith.mulf %27, %24 : vector<1x128xf32>
    %29 = arith.addf %26, %28 : vector<1x128xf32>
    %30 = vector.extract_strided_slice %22 {offsets = [0, 256], sizes = [1, 128], strides = [1, 1]} : vector<1x384xf32> to vector<1x128xf32>
    %31 = math.tanh %29 : vector<1x128xf32>
    %32 = arith.mulf %30, %31 : vector<1x128xf32>
    %cst_8 = arith.constant dense<0.000000e+00> : vector<1x512xf32>
    %33 = tpu.matmul %32, %12, %cst_8 {dimension_numbers = #tpu.dot_dimension_numbers<[1], [0], [0], [1], [0, 0, 1, 1], [], []>} : vector<1x128xf32>, vector<128x512xf32>, vector<1x512xf32> -> vector<1x512xf32>
    %34 = arith.addf %5, %33 : vector<1x512xf32>
    %35 = vector.extract_strided_slice %34 {offsets = [0, 0], sizes = [1, 384], strides = [1, 1]} : vector<1x512xf32> to vector<1x384xf32>
    %36 = arith.negf %35 : vector<1x384xf32>
    %37 = math.exp %36 : vector<1x384xf32>
    %cst_9 = arith.constant 1.000000e+00 : f32
    %38 = vector.broadcast %cst_9 : f32 to vector<1x384xf32>
    %39 = arith.addf %38, %37 : vector<1x384xf32>
    %40 = arith.divf %38, %39 : vector<1x384xf32>
    %41 = vector.extract_strided_slice %34 {offsets = [0, 384], sizes = [1, 128], strides = [1, 1]} : vector<1x512xf32> to vector<1x128xf32>
    %42 = math.tanh %41 : vector<1x128xf32>
    %43 = vector.extract_strided_slice %40 {offsets = [0, 128], sizes = [1, 128], strides = [1, 1]} : vector<1x384xf32> to vector<1x128xf32>
    %44 = arith.mulf %43, %29 : vector<1x128xf32>
    %45 = vector.extract_strided_slice %40 {offsets = [0, 0], sizes = [1, 128], strides = [1, 1]} : vector<1x384xf32> to vector<1x128xf32>
    %46 = arith.mulf %45, %42 : vector<1x128xf32>
    %47 = arith.addf %44, %46 : vector<1x128xf32>
    %48 = vector.extract_strided_slice %40 {offsets = [0, 256], sizes = [1, 128], strides = [1, 1]} : vector<1x384xf32> to vector<1x128xf32>
    %49 = math.tanh %47 : vector<1x128xf32>
    %50 = arith.mulf %48, %49 : vector<1x128xf32>
    %cst_10 = arith.constant dense<0.000000e+00> : vector<1x512xf32>
    %51 = tpu.matmul %50, %12, %cst_10 {dimension_numbers = #tpu.dot_dimension_numbers<[1], [0], [0], [1], [0, 0, 1, 1], [], []>} : vector<1x128xf32>, vector<128x512xf32>, vector<1x512xf32> -> vector<1x512xf32>
    %52 = arith.addf %8, %51 : vector<1x512xf32>
    %53 = vector.extract_strided_slice %52 {offsets = [0, 0], sizes = [1, 384], strides = [1, 1]} : vector<1x512xf32> to vector<1x384xf32>
    %54 = arith.negf %53 : vector<1x384xf32>
    %55 = math.exp %54 : vector<1x384xf32>
    %cst_11 = arith.constant 1.000000e+00 : f32
    %56 = vector.broadcast %cst_11 : f32 to vector<1x384xf32>
    %57 = arith.addf %56, %55 : vector<1x384xf32>
    %58 = arith.divf %56, %57 : vector<1x384xf32>
    %59 = vector.extract_strided_slice %52 {offsets = [0, 384], sizes = [1, 128], strides = [1, 1]} : vector<1x512xf32> to vector<1x128xf32>
    %60 = math.tanh %59 : vector<1x128xf32>
    %61 = vector.extract_strided_slice %58 {offsets = [0, 128], sizes = [1, 128], strides = [1, 1]} : vector<1x384xf32> to vector<1x128xf32>
    %62 = arith.mulf %61, %47 : vector<1x128xf32>
    %63 = vector.extract_strided_slice %58 {offsets = [0, 0], sizes = [1, 128], strides = [1, 1]} : vector<1x384xf32> to vector<1x128xf32>
    %64 = arith.mulf %63, %60 : vector<1x128xf32>
    %65 = arith.addf %62, %64 : vector<1x128xf32>
    %66 = vector.extract_strided_slice %58 {offsets = [0, 256], sizes = [1, 128], strides = [1, 1]} : vector<1x384xf32> to vector<1x128xf32>
    %67 = math.tanh %65 : vector<1x128xf32>
    %68 = arith.mulf %66, %67 : vector<1x128xf32>
    %cst_12 = arith.constant dense<0.000000e+00> : vector<1x512xf32>
    %69 = tpu.matmul %68, %12, %cst_12 {dimension_numbers = #tpu.dot_dimension_numbers<[1], [0], [0], [1], [0, 0, 1, 1], [], []>} : vector<1x128xf32>, vector<128x512xf32>, vector<1x512xf32> -> vector<1x512xf32>
    %70 = arith.addf %11, %69 : vector<1x512xf32>
    %71 = vector.extract_strided_slice %70 {offsets = [0, 0], sizes = [1, 384], strides = [1, 1]} : vector<1x512xf32> to vector<1x384xf32>
    %72 = arith.negf %71 : vector<1x384xf32>
    %73 = math.exp %72 : vector<1x384xf32>
    %cst_13 = arith.constant 1.000000e+00 : f32
    %74 = vector.broadcast %cst_13 : f32 to vector<1x384xf32>
    %75 = arith.addf %74, %73 : vector<1x384xf32>
    %76 = arith.divf %74, %75 : vector<1x384xf32>
    %77 = vector.extract_strided_slice %70 {offsets = [0, 384], sizes = [1, 128], strides = [1, 1]} : vector<1x512xf32> to vector<1x128xf32>
    %78 = math.tanh %77 : vector<1x128xf32>
    %79 = vector.extract_strided_slice %76 {offsets = [0, 128], sizes = [1, 128], strides = [1, 1]} : vector<1x384xf32> to vector<1x128xf32>
    %80 = arith.mulf %79, %65 : vector<1x128xf32>
    %81 = vector.extract_strided_slice %76 {offsets = [0, 0], sizes = [1, 128], strides = [1, 1]} : vector<1x384xf32> to vector<1x128xf32>
    %82 = arith.mulf %81, %78 : vector<1x128xf32>
    %83 = arith.addf %80, %82 : vector<1x128xf32>
    %84 = vector.extract_strided_slice %76 {offsets = [0, 256], sizes = [1, 128], strides = [1, 1]} : vector<1x384xf32> to vector<1x128xf32>
    %85 = math.tanh %83 : vector<1x128xf32>
    %86 = arith.mulf %84, %85 : vector<1x128xf32>
    %87 = tpu.concatenate %32, %50, %68, %86 in 0 : vector<1x128xf32>, vector<1x128xf32>, vector<1x128xf32>, vector<1x128xf32> -> vector<4x128xf32>
    %c0_14 = arith.constant 0 : index
    %c0_15 = arith.constant 0 : index
    %88 = vector.load %arg2[%c0_14, %c0_15] : memref<136x128xf32, #tpu.memory_space<vmem>>, vector<128x128xf32>
    %c128 = arith.constant 128 : index
    %c0_16 = arith.constant 0 : index
    %89 = vector.load %arg2[%c128, %c0_16] : memref<136x128xf32, #tpu.memory_space<vmem>>, vector<1x128xf32>
    %cst_17 = arith.constant dense<0.000000e+00> : vector<4x128xf32>
    %90 = tpu.matmul %87, %88, %cst_17 {dimension_numbers = #tpu.dot_dimension_numbers<[1], [0], [0], [1], [0, 0, 1, 1], [], []>} : vector<4x128xf32>, vector<128x128xf32>, vector<4x128xf32> -> vector<4x128xf32>
    %91 = vector.broadcast %89 : vector<1x128xf32> to vector<4x128xf32>
    %92 = arith.addf %90, %91 : vector<4x128xf32>
    %cst_18 = arith.constant dense<0xFF800000> : vector<4xf32>
    %93 = vector.multi_reduction <maximumf>, %92, %cst_18 [1] : vector<4x128xf32> to vector<4xf32>
    %94 = vector.shape_cast %93 : vector<4xf32> to vector<4x1xf32>
    %95 = vector.broadcast %94 : vector<4x1xf32> to vector<4x128xf32>
    %96 = arith.subf %92, %95 : vector<4x128xf32>
    %97 = math.exp %96 : vector<4x128xf32>
    %cst_19 = arith.constant dense<0.000000e+00> : vector<4xf32>
    %98 = vector.multi_reduction <add>, %97, %cst_19 [1] : vector<4x128xf32> to vector<4xf32>
    %99 = vector.shape_cast %98 : vector<4xf32> to vector<4x1xf32>
    %100 = math.log %99 : vector<4x1xf32>
    %101 = arith.addf %94, %100 : vector<4x1xf32>
    %102 = vector.broadcast %101 : vector<4x1xf32> to vector<4x128xf32>
    %103 = arith.subf %92, %102 : vector<4x128xf32>
    %c0_20 = arith.constant 0 : index
    %c0_21 = arith.constant 0 : index
    %104 = vector.load %arg3[%c0_20, %c0_21] : memref<4x128xf32, #tpu.memory_space<vmem>>, vector<4x128xf32>
    tpu.vector_store %arg3[%c0_20, %c0_21], %103 {strides = array<i32>} : memref<4x128xf32, #tpu.memory_space<vmem>>, vector<4x128xf32>,
    return
  }
}

</mosaic_0001>

<bundles_post_ra>
// kernel: lstm_tagger_forward.1
= control target key start
LH: loop header
LB: loop body
LE: loop exit
PB: predicated region body
PF: predicated region fallthrough
CT: control target
= control target key end

     0   :  { %8 = vsyncpa [#allocation5], 0  ;;  %s1378_s0 = inlined_call_operand.hbm [shape: s32[4], index: 0, kind: input, shape index: {}]   ;;  %s1379_s1 = inlined_call_operand.hbm [shape: f32[144,512], index: 1, kind: input, shape index: {}]   ;;  %s1380_s2 = inlined_call_operand.hbm [shape: f32[136,128], index: 2, kind: input, shape index: {}]   ;;  %s1381_s3 = inlined_call_operand.hbm [shape: f32[4,128], index: 3, kind: output, shape index: {}]  }
   0x1   :  { %9 = vsyncpa [#allocation3], 0 }
   0x2   :  { %10 = vsyncpa [#allocation8], 0 }
   0x3   :  { %11 = vsyncpa [#allocation4], 0  ;;  %s17_s14 = sshll.u32 %s1378_s0, 4  ;;  %s25_s17 = sshll.u32 %s1379_s1, 4  ;;  %s18_s14 = int_to_ptr.hbm [resolvable:$true] %s17_s14  ;;  %s26_s17 = int_to_ptr.hbm [resolvable:$true] %s25_s17 }
   0x4   :  { %s921_s18 = smov [#allocation2]   ;;  %s922_s19 = smov [#allocation6]  }
   0x5   :  { %20 = dma.hbm_to_smem %s18_s14, 16, %s921_s18, [#allocation5]  }
   0x6   :  { %s27_s20 = sshll.u32 %s922_s19, 4  ;;  %s923_s21 = smov 512   ;;  %s28_s20 = int_to_ptr.vmem [resolvable:$true] %s27_s20 }
   0x7   :  { %s924_s22 = smov 32   ;;  %s38_s25 = sshll.u32 %s1380_s2, 4  ;;  %s39_s25 = int_to_ptr.hbm [resolvable:$true] %s38_s25 }
   0x8   :  { %33 = dma.hbm_to_vmem [thread:$0]  %s26_s17, 9216, %s28_s20, [#allocation3], %s923_s21, %s923_s21, %s924_s22  }
   0x9   :  { %s925_s0 = smov [#allocation7]   ;;  %s926_s27 = smov 128  }
   0xa   :  { %s40_s26 = sshll.u32 %s925_s0, 4  ;;  %s927_s28 = smov 8   ;;  %s41_s26 = int_to_ptr.vmem [resolvable:$true] %s40_s26 }
   0xb   :  { %46 = dma.hbm_to_vmem [thread:$0]  %s39_s25, 2176, %s41_s26, [#allocation8], %s926_s27, %s926_s27, %s927_s28  }
   0xc   :  { %913 = dma.done.wait [#allocation5], 16  }
   0xd   :  { %914 = vsyncadd [#allocation5], 4294967280 }
   0xe   :  { %915 = dma.done.wait [#allocation3], 9216  }
   0xf   :  { %916 = vsyncadd [#allocation3], 4294958080 }
  0x10   :  { %917 = dma.done.wait [#allocation8], 2176  }
  0x11   :  { %918 = vsyncadd [#allocation8], 4294965120 }
  0x12   :  { %59 = sfence }
  0x13   :  { %v959_v0 = vld [vmem:[#allocation6 + $0x230] sm:$0xff]  ;;  %v961_v1 = vld [vmem:[#allocation6 + $0x238] sm:$0xff]  ;;  %v973_v6 = vld [vmem:[#allocation6 + $0x228] sm:$0xff]  ;;  %v928_v62 = vmov 0.0   ;;  %s60_s1 = sld [smem:[#allocation2]]  ;;  %vm251_vm0 = vcmask 1040384  }
  0x14   :  { %v963_v2 = vld [vmem:[#allocation6 + $0x210] sm:$0xff]  ;;  %204 = vmatpush.msra.mxu2 %v959_v0  ;;  %224 = vmatpush.msra.mxu3 %v961_v1  ;;  %v967_v3 = vld [vmem:[#allocation6 + $0x218] sm:$0xff]  ;;  %v977_v7 = vld [vmem:[#allocation6 + $0x220] sm:$0xff]  ;;  %vm253_vm1 = vcmask 1042434   ;;  %vm255_vm2 = vcmask 1041408   ;;  %s766_s6 = sld [smem:[#allocation2 + $0x1]] }
  0x15   :  { %v969_v4 = vld [vmem:[#allocation6 + $0x1f0] sm:$0xff]  ;;  %v971_v5 = vld [vmem:[#allocation6 + $0x1f8] sm:$0xff]  ;;  %v979_v8 = vld [vmem:[#allocation6 + $0x208] sm:$0xff]  ;;  %184 = vmatpush.msra.mxu1 %v973_v6  ;;  %164 = vmatpush.msra.mxu0 %v977_v7  ;;  %s769_s12 = sld [smem:[#allocation2 + $0x2]]  ;;  %s929_s24 = smov [#allocation9]  }
  0x16   :  { %205 = vmatpush.msra.mxu2 %v963_v2  ;;  %225 = vmatpush.msra.mxu3 %v967_v3  ;;  %v982_v9 = vld [vmem:[#allocation6 + $0x1d0] sm:$0xff]  ;;  %v984_v10 = vld [vmem:[#allocation6 + $0x1d8] sm:$0xff]  ;;  %v987_v11 = vld [vmem:[#allocation6 + $0x200] sm:$0xff]  ;;  %s772_s18 = sld [smem:[#allocation2 + $0x3]]  ;;  %s738_s25 = sshll.u32 %s929_s24, 4  ;;  %s739_s25 = int_to_ptr.vmem [resolvable:$true] %s738_s25 }
  0x17   :  { %v991_v12 = vld [vmem:[#allocation6 + $0x1e8] sm:$0xff]  ;;  %v993_v13 = vld [vmem:[#allocation6 + $0x1e0] sm:$0xff]  ;;  %185 = vmatpush.msra.mxu1 %v979_v8  ;;  %v996_v14 = vld [vmem:[#allocation6 + $0x1b0] sm:$0xff]  ;;  %165 = vmatpush.msra.mxu0 %v987_v11  ;;  %s740_s27 = sshll.u32 %s1381_s3, 4  ;;  %s741_s27 = int_to_ptr.hbm [resolvable:$true] %s740_s27 }
  0x18   :  { %206 = vmatpush.msra.mxu2 %v969_v4  ;;  %226 = vmatpush.msra.mxu3 %v971_v5  ;;  %v998_v15 = vld [vmem:[#allocation6 + $0x1b8] sm:$0xff]  ;;  %v1003_v16 = vld [vmem:[#allocation6 + $0x1c8] sm:$0xff]  ;;  %v1005_v17 = vld [vmem:[#allocation6 + $0x1c0] sm:$0xff] }
  0x19   :  { %186 = vmatpush.msra.mxu1 %v991_v12  ;;  %v1008_v18 = vld [vmem:[#allocation6 + $0x190] sm:$0xff]  ;;  %v1010_v19 = vld [vmem:[#allocation6 + $0x198] sm:$0xff]  ;;  %166 = vmatpush.msra.mxu0 %v993_v13  ;;  %v1015_v20 = vld [vmem:[#allocation6 + $0x1a8] sm:$0xff]  ;;  %s61_s2 = sshra.s32 %s60_s1, 3  ;;  %s64_s29 = sand.u32 7, %s60_s1 }
  0x1a   :  { %207 = vmatpush.msra.mxu2 %v982_v9  ;;  %227 = vmatpush.msra.mxu3 %v984_v10  ;;  %v1017_v21 = vld [vmem:[#allocation6 + $0x1a0] sm:$0xff]  ;;  %v1020_v22 = vld [vmem:[#allocation6 + $0x170] sm:$0xff]  ;;  %v1022_v23 = vld [vmem:[#allocation6 + $0x178] sm:$0xff]  ;;  %s779_s30 = sshll.u32 %s61_s2, 5  ;;  %s71_s7 = sshra.s32 %s766_s6, 3 }
  0x1b   :  { %187 = vmatpush.msra.mxu1 %v1003_v16  ;;  %167 = vmatpush.msra.mxu0 %v1005_v17  ;;  %v1027_v24 = vld [vmem:[#allocation6 + $0x188] sm:$0xff]  ;;  %v1029_v25 = vld [vmem:[#allocation6 + $0x180] sm:$0xff]  ;;  %v1032_v26 = vld [vmem:[#allocation6 + $0x150] sm:$0xff]  ;;  %s67_s4 = sadd.s32 %s779_s30, %s64_s29  ;;  %s74_s8 = sand.u32 7, %s766_s6 }
  0x1c   :  { %208 = vmatpush.msra.mxu2 %v996_v14  ;;  %228 = vmatpush.msra.mxu3 %v998_v15  ;;  %v1034_v27 = vld [vmem:[#allocation6 + $0x158] sm:$0xff]  ;;  %v1039_v28 = vld [vmem:[#allocation6 + $0x168] sm:$0xff]  ;;  %v1041_v29 = vld [vmem:[#allocation6 + $0x160] sm:$0xff]  ;;  %s68_s5 = scalar_lea.vmem [#allocation6], %s67_s4  ;;  %s780_s9 = sshll.u32 %s71_s7, 5 }
  0x1d   :  { %188 = vmatpush.msra.mxu1 %v1015_v20  ;;  %168 = vmatpush.msra.mxu0 %v1017_v21  ;;  %v1044_v30 = vld [vmem:[#allocation6 + $0x130] sm:$0xff]  ;;  %v1046_v31 = vld [vmem:[#allocation6 + $0x138] sm:$0xff]  ;;  %v1051_v32 = vld [vmem:[#allocation6 + $0x148] sm:$0xff]  ;;  %s77_s10 = sadd.s32 %s780_s9, %s74_s8  ;;  %s81_s13 = sshra.s32 %s769_s12, 3 }
  0x1e   :  { %209 = vmatpush.msra.mxu2 %v1008_v18  ;;  %229 = vmatpush.msra.mxu3 %v1010_v19  ;;  %v1053_v33 = vld [vmem:[#allocation6 + $0x140] sm:$0xff]  ;;  %v1056_v34 = vld [vmem:[#allocation6 + $0x110] sm:$0xff]  ;;  %v1058_v35 = vld [vmem:[#allocation6 + $0x118] sm:$0xff]  ;;  %s78_s11 = scalar_lea.vmem [#allocation6], %s77_s10  ;;  %s84_s14 = sand.u32 7, %s769_s12 }
  0x1f   :  { %189 = vmatpush.msra.mxu1 %v1027_v24  ;;  %169 = vmatpush.msra.mxu0 %v1029_v25  ;;  %v1063_v36 = vld [vmem:[#allocation6 + $0x128] sm:$0xff]  ;;  %v1065_v37 = vld [vmem:[#allocation6 + $0x120] sm:$0xff]  ;;  %v1068_v38 = vld [vmem:[#allocation6 + $0xf0] sm:$0xff]  ;;  %s781_s15 = sshll.u32 %s81_s13, 5  ;;  %s91_s19 = sshra.s32 %s772_s18, 3 }
  0x20   :  { %210 = vmatpush.msra.mxu2 %v1020_v22  ;;  %230 = vmatpush.msra.mxu3 %v1022_v23  ;;  %v1070_v39 = vld [vmem:[#allocation6 + $0xf8] sm:$0xff]  ;;  %v1075_v40 = vld [vmem:[#allocation6 + $0x108] sm:$0xff]  ;;  %v1077_v41 = vld [vmem:[#allocation6 + $0x100] sm:$0xff]  ;;  %s87_s16 = sadd.s32 %s781_s15, %s84_s14  ;;  %s94_s20 = sand.u32 7, %s772_s18 }
  0x21   :  { %190 = vmatpush.msra.mxu1 %v1039_v28  ;;  %170 = vmatpush.msra.mxu0 %v1041_v29  ;;  %v1080_v42 = vld [vmem:[#allocation6 + $0xd0] sm:$0xff]  ;;  %v1082_v43 = vld [vmem:[#allocation6 + $0xd8] sm:$0xff]  ;;  %v1087_v44 = vld [vmem:[#allocation6 + $0xe8] sm:$0xff]  ;;  %s88_s17 = scalar_lea.vmem [#allocation6], %s87_s16  ;;  %s782_s21 = sshll.u32 %s91_s19, 5 }
  0x22   :  { %211 = vmatpush.msra.mxu2 %v1032_v26  ;;  %231 = vmatpush.msra.mxu3 %v1034_v27  ;;  %1402 = vst [vmem:[#allocation14_spill] sm:$0xff] %v1080_v42  ;;  %v1089_v45 = vld [vmem:[#allocation6 + $0xe0] sm:$0xff]  ;;  %v1092_v46 = vld [vmem:[#allocation6 + $0xb0] sm:$0xff]  ;;  %v1094_v47 = vld [vmem:[#allocation6 + $0xb8] sm:$0xff]  ;;  %s97_s22 = sadd.s32 %s782_s21, %s94_s20 }
  0x23   :  { %191 = vmatpush.msra.mxu1 %v1051_v32  ;;  %171 = vmatpush.msra.mxu0 %v1053_v33  ;;  %1403 = vst [vmem:[#allocation15_spill] sm:$0xff] %v1082_v43  ;;  %v1099_v48 = vld [vmem:[#allocation6 + $0xc8] sm:$0xff]  ;;  %v1101_v49 = vld [vmem:[#allocation6 + $0xc0] sm:$0xff]  ;;  %v1104_v50 = vld [vmem:[#allocation6 + $0x90] sm:$0xff]  ;;  %s98_s23 = scalar_lea.vmem [#allocation6], %s97_s22 }
  0x24   :  { %212 = vmatpush.msra.mxu2 %v1044_v30  ;;  %232 = vmatpush.msra.mxu3 %v1046_v31  ;;  %1404 = vst [vmem:[#allocation16_spill] sm:$0xff] %v1092_v46  ;;  %v1106_v51 = vld [vmem:[#allocation6 + $0x98] sm:$0xff]  ;;  %v1111_v52 = vld [vmem:[#allocation6 + $0xa8] sm:$0xff]  ;;  %v1113_v53 = vld [vmem:[#allocation6 + $0xa0] sm:$0xff] }
  0x25   :  { %192 = vmatpush.msra.mxu1 %v1063_v36  ;;  %172 = vmatpush.msra.mxu0 %v1065_v37  ;;  %1405 = vst [vmem:[#allocation17_spill] sm:$0xff] %v1094_v47  ;;  %v1116_v54 = vld [vmem:[#allocation6 + $0x70] sm:$0xff]  ;;  %v1118_v55 = vld [vmem:[#allocation6 + $0x78] sm:$0xff]  ;;  %v1123_v56 = vld [vmem:[#allocation6 + $0x88] sm:$0xff] }
  0x26   :  { %213 = vmatpush.msra.mxu2 %v1056_v34  ;;  %233 = vmatpush.msra.mxu3 %v1058_v35  ;;  %1406 = vst [vmem:[#allocation18_spill] sm:$0xff] %v1104_v50  ;;  %v1125_v57 = vld [vmem:[#allocation6 + $0x80] sm:$0xff]  ;;  %v1128_v58 = vld [vmem:[#allocation6 + $0x50] sm:$0xff]  ;;  %v1130_v59 = vld [vmem:[#allocation6 + $0x58] sm:$0xff] }
  0x27   :  { %193 = vmatpush.msra.mxu1 %v1075_v40  ;;  %173 = vmatpush.msra.mxu0 %v1077_v41  ;;  %1407 = vst [vmem:[#allocation19_spill] sm:$0xff] %v1106_v51  ;;  %v1137_v60 = vld [vmem:[#allocation6 + $0x68] sm:$0xff]  ;;  %v1139_v61 = vld [vmem:[#allocation6 + $0x60] sm:$0xff] }
  0x28   :  { %214 = vmatpush.msra.mxu2 %v1068_v38  ;;  %234 = vmatpush.msra.mxu3 %v1070_v39  ;;  %1408 = vst [vmem:[#allocation20_spill] sm:$0xff] %v1111_v52  ;;  %v1143_v63 = vld [vmem:[#allocation6 + $0x48] sm:$0xff] }
  0x29   :  { %194 = vmatpush.msra.mxu1 %v1087_v44  ;;  %174 = vmatpush.msra.mxu0 %v1089_v45  ;;  %1409 = vst [vmem:[#allocation21_spill] sm:$0xff] %v1113_v53 }
  0x2a   :  { %215 = vmatpush.msra.mxu2 %v1080_v42  ;;  %235 = vmatpush.msra.mxu3 %v1082_v43  ;;  %1410 = vst [vmem:[#allocation22_spill] sm:$0xff] %v1116_v54 }
  0x2b   :  { %195 = vmatpush.msra.mxu1 %v1099_v48  ;;  %1411 = vst [vmem:[#allocation23_spill] sm:$0xff] %v1118_v55  ;;  %175 = vmatpush.msra.mxu0 %v1101_v49 }
  0x2c   :  { %216 = vmatpush.msra.mxu2 %v1092_v46  ;;  %236 = vmatpush.msra.mxu3 %v1094_v47  ;;  %1412 = vst [vmem:[#allocation24_spill] sm:$0xff] %v1123_v56 }
  0x2d   :  { %1413 = vst [vmem:[#allocation25_spill] sm:$0xff] %v1125_v57  ;;  %196 = vmatpush.msra.mxu1 %v1111_v52  ;;  %176 = vmatpush.msra.mxu0 %v1113_v53 }
  0x2e   :  { %217 = vmatpush.msra.mxu2 %v1104_v50  ;;  %237 = vmatpush.msra.mxu3 %v1106_v51  ;;  %1414 = vst [vmem:[#allocation26_spill] sm:$0xff] %v1128_v58 }
  0x2f   :  { %1415 = vst [vmem:[#allocation27_spill] sm:$0xff] %v1130_v59  ;;  %197 = vmatpush.msra.mxu1 %v1123_v56  ;;  %177 = vmatpush.msra.mxu0 %v1125_v57 }
  0x30   :  { %218 = vmatpush.msra.mxu2 %v1116_v54  ;;  %238 = vmatpush.msra.mxu3 %v1118_v55  ;;  %1416 = vst [vmem:[#allocation28_spill] sm:$0xff] %v1137_v60  ;;  %v1145_v54 = vld [vmem:[#allocation6 + $0x40] sm:$0xff] }
  0x31   :  { %1417 = vst [vmem:[#allocation29_spill] sm:$0xff] %v1139_v61  ;;  %198 = vmatpush.msra.mxu1 %v1137_v60  ;;  %178 = vmatpush.msra.mxu0 %v1139_v61 }
  0x32   :  { %219 = vmatpush.msra.mxu2 %v1128_v58  ;;  %239 = vmatpush.msra.mxu3 %v1130_v59  ;;  %1418 = vst [vmem:[#allocation30_spill] sm:$0xff] %v1143_v63 }
  0x33   :  { %220 = vmatmul.f32.vlgmr.msra.gmra.mxu2 %v928_v62  ;;  %240 = vmatmul.f32.vlgmr.msra.gmra.mxu3 %v928_v62  ;;  %1419 = vst [vmem:[#allocation31_spill] sm:$0xff] %v1145_v54 }
  0x34   :  { %332 = vmatpush.msrb.mxu2 %v959_v0  ;;  %352 = vmatpush.msrb.mxu3 %v961_v1 }
  0x35   :  { %199 = vmatpush.msra.mxu1 %v1143_v63  ;;  %179 = vmatpush.msra.mxu0 %v1145_v54 }
  0x36   :  { %200 = vmatmul.f32.vlgmr.msra.gmra.mxu1 %v928_v62  ;;  %180 = vmatmul.f32.vlgmr.msra.gmra.mxu0 %v928_v62  ;;  %v1420_v62 = vld [vmem:[#allocation22_spill] sm:$0xff] }
  0x37   :  { %292 = vmatpush.msrb.mxu0 %v977_v7  ;;  %312 = vmatpush.msrb.mxu1 %v973_v6 }
  0x38   :  { %333 = vmatpush.msrb.mxu2 %v963_v2  ;;  %353 = vmatpush.msrb.mxu3 %v967_v3 }
  0x39   :  { %293 = vmatpush.msrb.mxu0 %v987_v11  ;;  %313 = vmatpush.msrb.mxu1 %v979_v8 }
  0x3a   :  { %334 = vmatpush.msrb.mxu2 %v969_v4  ;;  %354 = vmatpush.msrb.mxu3 %v971_v5 }
  0x3b   :  { %294 = vmatpush.msrb.mxu0 %v993_v13  ;;  %314 = vmatpush.msrb.mxu1 %v991_v12 }
  0x3c   :  { %335 = vmatpush.msrb.mxu2 %v982_v9  ;;  %355 = vmatpush.msrb.mxu3 %v984_v10 }
  0x3d   :  { %295 = vmatpush.msrb.mxu0 %v1005_v17  ;;  %315 = vmatpush.msrb.mxu1 %v1003_v16 }
  0x3e   :  { %336 = vmatpush.msrb.mxu2 %v996_v14  ;;  %356 = vmatpush.msrb.mxu3 %v998_v15 }
  0x3f   :  { %296 = vmatpush.msrb.mxu0 %v1017_v21  ;;  %316 = vmatpush.msrb.mxu1 %v1015_v20 }
  0x40   :  { %337 = vmatpush.msrb.mxu2 %v1008_v18  ;;  %357 = vmatpush.msrb.mxu3 %v1010_v19 }
  0x41   :  { %297 = vmatpush.msrb.mxu0 %v1029_v25  ;;  %317 = vmatpush.msrb.mxu1 %v1027_v24 }
  0x42   :  { %338 = vmatpush.msrb.mxu2 %v1020_v22  ;;  %358 = vmatpush.msrb.mxu3 %v1022_v23 }
  0x43   :  { %298 = vmatpush.msrb.mxu0 %v1041_v29  ;;  %318 = vmatpush.msrb.mxu1 %v1039_v28 }
  0x44   :  { %339 = vmatpush.msrb.mxu2 %v1032_v26  ;;  %359 = vmatpush.msrb.mxu3 %v1034_v27 }
  0x45   :  { %299 = vmatpush.msrb.mxu0 %v1053_v33  ;;  %319 = vmatpush.msrb.mxu1 %v1051_v32 }
  0x46   :  { %340 = vmatpush.msrb.mxu2 %v1044_v30  ;;  %360 = vmatpush.msrb.mxu3 %v1046_v31 }
  0x47   :  { %300 = vmatpush.msrb.mxu0 %v1065_v37  ;;  %320 = vmatpush.msrb.mxu1 %v1063_v36 }
  0x48   :  { %341 = vmatpush.msrb.mxu2 %v1056_v34  ;;  %361 = vmatpush.msrb.mxu3 %v1058_v35 }
  0x49   :  { %301 = vmatpush.msrb.mxu0 %v1077_v41  ;;  %321 = vmatpush.msrb.mxu1 %v1075_v40 }
  0x4a   :  { %342 = vmatpush.msrb.mxu2 %v1068_v38  ;;  %362 = vmatpush.msrb.mxu3 %v1070_v39 }
  0x4b   :  { %302 = vmatpush.msrb.mxu0 %v1089_v45  ;;  %322 = vmatpush.msrb.mxu1 %v1087_v44 }
  0x4c   :  { %343 = vmatpush.msrb.mxu2 %v1080_v42  ;;  %363 = vmatpush.msrb.mxu3 %v1082_v43 }
  0x4d   :  { %303 = vmatpush.msrb.mxu0 %v1101_v49  ;;  %323 = vmatpush.msrb.mxu1 %v1099_v48 }
  0x4e   :  { %344 = vmatpush.msrb.mxu2 %v1092_v46  ;;  %364 = vmatpush.msrb.mxu3 %v1094_v47 }
  0x4f   :  { %304 = vmatpush.msrb.mxu0 %v1113_v53  ;;  %324 = vmatpush.msrb.mxu1 %v1111_v52 }
  0x50   :  { %345 = vmatpush.msrb.mxu2 %v1104_v50  ;;  %365 = vmatpush.msrb.mxu3 %v1106_v51 }
  0x51   :  { %305 = vmatpush.msrb.mxu0 %v1125_v57  ;;  %325 = vmatpush.msrb.mxu1 %v1123_v56 }
  0x52   :  { %346 = vmatpush.msrb.mxu2 %v1420_v62  ;;  %366 = vmatpush.msrb.mxu3 %v1118_v55 }
  0x53   :  { %306 = vmatpush.msrb.mxu0 %v1139_v61  ;;  %326 = vmatpush.msrb.mxu1 %v1137_v60 }
  0x54   :  { %347 = vmatpush.msrb.mxu2 %v1128_v58  ;;  %367 = vmatpush.msrb.mxu3 %v1130_v59 }
  0x55   :  { %307 = vmatpush.msrb.mxu0 %v1145_v54  ;;  %327 = vmatpush.msrb.mxu1 %v1143_v63 }
  0x56   :  { %457 = vmatpush.msra.mxu2 %v959_v0  ;;  %477 = vmatpush.msra.mxu3 %v961_v1 }
  0x57   :  { %417 = vmatpush.msra.mxu0 %v977_v7  ;;  %437 = vmatpush.msra.mxu1 %v973_v6 }
  0x58   :  { %458 = vmatpush.msra.mxu2 %v963_v2  ;;  %478 = vmatpush.msra.mxu3 %v967_v3 }
  0x59   :  { %418 = vmatpush.msra.mxu0 %v987_v11  ;;  %438 = vmatpush.msra.mxu1 %v979_v8 }
  0x5a   :  { %459 = vmatpush.msra.mxu2 %v969_v4  ;;  %479 = vmatpush.msra.mxu3 %v971_v5 }
  0x5b   :  { %419 = vmatpush.msra.mxu0 %v993_v13  ;;  %439 = vmatpush.msra.mxu1 %v991_v12 }
  0x5c   :  { %460 = vmatpush.msra.mxu2 %v982_v9  ;;  %480 = vmatpush.msra.mxu3 %v984_v10 }
  0x5d   :  { %420 = vmatpush.msra.mxu0 %v1005_v17  ;;  %440 = vmatpush.msra.mxu1 %v1003_v16 }
  0x5e   :  { %461 = vmatpush.msra.mxu2 %v996_v14  ;;  %481 = vmatpush.msra.mxu3 %v998_v15 }
  0x5f   :  { %421 = vmatpush.msra.mxu0 %v1017_v21  ;;  %441 = vmatpush.msra.mxu1 %v1015_v20 }
  0x60   :  { %462 = vmatpush.msra.mxu2 %v1008_v18  ;;  %482 = vmatpush.msra.mxu3 %v1010_v19 }
  0x61   :  { %422 = vmatpush.msra.mxu0 %v1029_v25  ;;  %442 = vmatpush.msra.mxu1 %v1027_v24 }
  0x62   :  { %463 = vmatpush.msra.mxu2 %v1020_v22  ;;  %483 = vmatpush.msra.mxu3 %v1022_v23 }
  0x63   :  { %423 = vmatpush.msra.mxu0 %v1041_v29  ;;  %443 = vmatpush.msra.mxu1 %v1039_v28 }
  0x64   :  { %464 = vmatpush.msra.mxu2 %v1032_v26  ;;  %484 = vmatpush.msra.mxu3 %v1034_v27 }
  0x65   :  { %424 = vmatpush.msra.mxu0 %v1053_v33  ;;  %444 = vmatpush.msra.mxu1 %v1051_v32 }
  0x66   :  { %465 = vmatpush.msra.mxu2 %v1044_v30  ;;  %485 = vmatpush.msra.mxu3 %v1046_v31 }
  0x67   :  { %425 = vmatpush.msra.mxu0 %v1065_v37  ;;  %445 = vmatpush.msra.mxu1 %v1063_v36 }
  0x68   :  { %466 = vmatpush.msra.mxu2 %v1056_v34  ;;  %486 = vmatpush.msra.mxu3 %v1058_v35 }
  0x69   :  { %426 = vmatpush.msra.mxu0 %v1077_v41  ;;  %446 = vmatpush.msra.mxu1 %v1075_v40 }
  0x6a   :  { %467 = vmatpush.msra.mxu2 %v1068_v38  ;;  %487 = vmatpush.msra.mxu3 %v1070_v39 }
  0x6b   :  { %427 = vmatpush.msra.mxu0 %v1089_v45  ;;  %447 = vmatpush.msra.mxu1 %v1087_v44 }
  0x6c   :  { %468 = vmatpush.msra.mxu2 %v1080_v42  ;;  %488 = vmatpush.msra.mxu3 %v1082_v43 }
  0x6d   :  { %428 = vmatpush.msra.mxu0 %v1101_v49  ;;  %448 = vmatpush.msra.mxu1 %v1099_v48 }
  0x6e   :  { %469 = vmatpush.msra.mxu2 %v1092_v46  ;;  %489 = vmatpush.msra.mxu3 %v1094_v47 }
  0x6f   :  { %429 = vmatpush.msra.mxu0 %v1113_v53  ;;  %449 = vmatpush.msra.mxu1 %v1111_v52 }
  0x70   :  { %470 = vmatpush.msra.mxu2 %v1104_v50  ;;  %490 = vmatpush.msra.mxu3 %v1106_v51 }
  0x71   :  { %430 = vmatpush.msra.mxu0 %v1125_v57  ;;  %450 = vmatpush.msra.mxu1 %v1123_v56 }
  0x72   :  { %471 = vmatpush.msra.mxu2 %v1420_v62  ;;  %491 = vmatpush.msra.mxu3 %v1118_v55 }
  0x73   :  { %431 = vmatpush.msra.mxu0 %v1139_v61  ;;  %451 = vmatpush.msra.mxu1 %v1137_v60 }
  0x74   :  { %472 = vmatpush.msra.mxu2 %v1128_v58  ;;  %492 = vmatpush.msra.mxu3 %v1130_v59  ;;  %v69_v58 = vld [vmem:[%s68_s5] ss:$8 sm:$0xf] }
  0x75   :  { %432 = vmatpush.msra.mxu0 %v1145_v54  ;;  %452 = vmatpush.msra.mxu1 %v1143_v63 }
  0xb3   :  { %v201_v61 = vpop.f32.mrf.mxu1  ;;  %v181_v51 = vpop.f32.mrf.mxu0 }
  0xb4   :  { %v248_v60 = vrot.slane %v201_v61, 7 }
  0xb6   :  { %v221_v62 = vpop.f32.mrf.mxu2  ;;  %v241_v50 = vpop.f32.mrf.mxu3  ;;  %v252_v63 = vsel %vm251_vm0, %v181_v51, %v248_v60 }
  0xb7   :  { %v249_v55 = vrot.slane %v221_v62, 6  ;;  %v250_v54 = vrot.slane %v241_v50, 5 }
  0xb9   :  { %v254_v59 = vsel %vm253_vm1, %v249_v55, %v250_v54 }
  0xba   :  { %v256_v56 = vsel %vm255_vm2, %v252_v63, %v254_v59 }
  0xbb   :  { %v258_v57 = vadd.f32 %v256_v56, %v69_v58 }
  0xbd   :  { %v775_v47 = vmul.f32 -1.442695, %v258_v57  ;;  %v279_v43 = vrot.slane %v258_v57, 3 }
  0xbf   :  { %793 = vpow2.f32 %v775_v47 }
  0xc5   :  { %v794_v46 = vpop.eup %793 }
  0xc6   :  { %v262_v52 = vadd.f32 1.0, %v794_v46 }
  0xc8   :  { %795 = vrcp.f32 %v262_v52  ;;  %v274_v50 = vand.u32 2147483648, %v262_v52  ;;  %v272_v51 = vand.u32 2147483647, %v262_v52  ;;  %vm268_vm4 = vweird.f32 %v262_v52 }
  0xc9   :  { %797 = vtanh.f32 %v279_v43 }
  0xca   :  { %v275_v54 = vor.u32 1.1754944e-38, %v274_v50  ;;  %vm273_vm6 = vcmp.eq.f32.partialorder %v272_v51, 8.507059e+37 }
  0xce   :  { %v796_v61 = vpop.eup %795 }
  0xcf   :  { %v264_v53 = vmul.f32 %v796_v61, %v262_v52  ;;  %vm269_vm3 = vweird.f32 %v796_v61  ;;  %v798_v58 = vpop.eup %797 }
  0xd0   :  { %vm270_vm5 = vmor %vm268_vm4, %vm269_vm3  ;;  %vm678_vm3 = vcmask 1042432   ;;  %vm718_vm4 = vcmask 1043456  }
  0xd1   :  { %v265_v62 = vsub.f32 1.0, %v264_v53 }
  0xd3   :  { %v266_v42 = vmul.f32 %v796_v61, %v265_v62 }
  0xd5   :  { %v267_v60 = vadd.f32 %v796_v61, %v266_v42 }
  0xd7   :  { %v271_v55 = vsel %vm270_vm5, %v796_v61, %v267_v60 }
  0xd8   :  { %v276_v56 = vsel %vm273_vm6, %v275_v54, %v271_v55 }
  0xd9   :  { %v283_v47 = vrot.slane %v276_v56, 1  ;;  %v286_v59 = vmul.f32 %v798_v58, %v276_v56  ;;  %v289_v53 = vrot.slane %v276_v56, 2 }
  0xdb   :  { %v285_v46 = vmul.f32 0.0, %v283_v47 }
  0xdd   :  { %v1282_v63 = vadd.f32 %v286_v59, %v285_v46  ;;  %v89_v59 = vld [vmem:[%s88_s17] ss:$8 sm:$0xf] }
  0xdf   :  { %799 = vtanh.f32 %v1282_v63 }
  0xe5   :  { %v800_v57 = vpop.eup %799 }
  0xe6   :  { %v1285_v62 = vmul.f32 %v800_v57, %v289_v53 }
  0xe8   :  { %308 = vmatmul.f32.vlgmr.msrb.gmra.mxu0 %v1285_v62  ;;  %328 = vmatmul.f32.vlgmr.msrb.gmra.mxu1 %v1285_v62 }
  0xe9   :  { %348 = vmatmul.f32.vlgmr.msrb.gmra.mxu2 %v1285_v62  ;;  %368 = vmatmul.f32.vlgmr.msrb.gmra.mxu3 %v1285_v62 }
  0xea   :  { %542 = vmatpush.msrb.mxu0 %v977_v7  ;;  %562 = vmatpush.msrb.mxu1 %v973_v6  ;;  %v1427_v6 = vld [vmem:[#allocation25_spill] sm:$0xff]  ;;  %v1428_v7 = vld [vmem:[#allocation24_spill] sm:$0xff] }
  0xeb   :  { %582 = vmatpush.msrb.mxu2 %v959_v0  ;;  %602 = vmatpush.msrb.mxu3 %v961_v1  ;;  %v1421_v0 = vld [vmem:[#allocation14_spill] sm:$0xff]  ;;  %v1422_v1 = vld [vmem:[#allocation15_spill] sm:$0xff] }
  0xec   :  { %543 = vmatpush.msrb.mxu0 %v987_v11  ;;  %563 = vmatpush.msrb.mxu1 %v979_v8  ;;  %v1429_v8 = vld [vmem:[#allocation18_spill] sm:$0xff]  ;;  %v1432_v11 = vld [vmem:[#allocation28_spill] sm:$0xff] }
  0xed   :  { %583 = vmatpush.msrb.mxu2 %v963_v2  ;;  %603 = vmatpush.msrb.mxu3 %v967_v3  ;;  %v1423_v2 = vld [vmem:[#allocation21_spill] sm:$0xff]  ;;  %v1424_v3 = vld [vmem:[#allocation20_spill] sm:$0xff] }
  0xee   :  { %544 = vmatpush.msrb.mxu0 %v993_v13  ;;  %564 = vmatpush.msrb.mxu1 %v991_v12  ;;  %v1433_v12 = vld [vmem:[#allocation22_spill] sm:$0xff]  ;;  %v1434_v13 = vld [vmem:[#allocation23_spill] sm:$0xff] }
  0xef   :  { %584 = vmatpush.msrb.mxu2 %v969_v4  ;;  %604 = vmatpush.msrb.mxu3 %v971_v5  ;;  %v1425_v4 = vld [vmem:[#allocation16_spill] sm:$0xff]  ;;  %v1426_v5 = vld [vmem:[#allocation17_spill] sm:$0xff] }
  0xf0   :  { %545 = vmatpush.msrb.mxu0 %v1005_v17  ;;  %565 = vmatpush.msrb.mxu1 %v1003_v16  ;;  %v1437_v16 = vld [vmem:[#allocation26_spill] sm:$0xff]  ;;  %v1438_v17 = vld [vmem:[#allocation27_spill] sm:$0xff] }
  0xf1   :  { %585 = vmatpush.msrb.mxu2 %v982_v9  ;;  %605 = vmatpush.msrb.mxu3 %v984_v10  ;;  %v1430_v9 = vld [vmem:[#allocation19_spill] sm:$0xff]  ;;  %v1431_v10 = vld [vmem:[#allocation29_spill] sm:$0xff] }
  0xf2   :  { %546 = vmatpush.msrb.mxu0 %v1017_v21  ;;  %566 = vmatpush.msrb.mxu1 %v1015_v20 }
  0xf3   :  { %586 = vmatpush.msrb.mxu2 %v996_v14  ;;  %606 = vmatpush.msrb.mxu3 %v998_v15  ;;  %v1435_v14 = vld [vmem:[#allocation31_spill] sm:$0xff]  ;;  %v1436_v15 = vld [vmem:[#allocation30_spill] sm:$0xff] }
  0xf4   :  { %547 = vmatpush.msrb.mxu0 %v1029_v25  ;;  %567 = vmatpush.msrb.mxu1 %v1027_v24  ;;  %v79_v25 = vld [vmem:[%s78_s11] ss:$8 sm:$0xf] }
  0xf5   :  { %587 = vmatpush.msrb.mxu2 %v1008_v18  ;;  %607 = vmatpush.msrb.mxu3 %v1010_v19 }
  0xf6   :  { %548 = vmatpush.msrb.mxu0 %v1041_v29  ;;  %568 = vmatpush.msrb.mxu1 %v1039_v28 }
  0xf7   :  { %588 = vmatpush.msrb.mxu2 %v1020_v22  ;;  %608 = vmatpush.msrb.mxu3 %v1022_v23 }
  0xf8   :  { %549 = vmatpush.msrb.mxu0 %v1053_v33  ;;  %569 = vmatpush.msrb.mxu1 %v1051_v32 }
  0xf9   :  { %589 = vmatpush.msrb.mxu2 %v1032_v26  ;;  %609 = vmatpush.msrb.mxu3 %v1034_v27 }
  0xfa   :  { %550 = vmatpush.msrb.mxu0 %v1065_v37  ;;  %570 = vmatpush.msrb.mxu1 %v1063_v36 }
  0xfb   :  { %590 = vmatpush.msrb.mxu2 %v1044_v30  ;;  %610 = vmatpush.msrb.mxu3 %v1046_v31 }
  0xfc   :  { %551 = vmatpush.msrb.mxu0 %v1077_v41  ;;  %571 = vmatpush.msrb.mxu1 %v1075_v40 }
  0xfd   :  { %591 = vmatpush.msrb.mxu2 %v1056_v34  ;;  %611 = vmatpush.msrb.mxu3 %v1058_v35 }
  0xfe   :  { %552 = vmatpush.msrb.mxu0 %v1089_v45  ;;  %572 = vmatpush.msrb.mxu1 %v1087_v44 }
  0xff   :  { %592 = vmatpush.msrb.mxu2 %v1068_v38  ;;  %612 = vmatpush.msrb.mxu3 %v1070_v39 }
 0x100   :  { %553 = vmatpush.msrb.mxu0 %v1101_v49  ;;  %573 = vmatpush.msrb.mxu1 %v1099_v48 }
 0x101   :  { %593 = vmatpush.msrb.mxu2 %v1421_v0  ;;  %613 = vmatpush.msrb.mxu3 %v1422_v1 }
 0x102   :  { %554 = vmatpush.msrb.mxu0 %v1423_v2  ;;  %574 = vmatpush.msrb.mxu1 %v1424_v3 }
 0x103   :  { %594 = vmatpush.msrb.mxu2 %v1425_v4  ;;  %614 = vmatpush.msrb.mxu3 %v1426_v5 }
 0x104   :  { %555 = vmatpush.msrb.mxu0 %v1427_v6  ;;  %575 = vmatpush.msrb.mxu1 %v1428_v7 }
 0x105   :  { %595 = vmatpush.msrb.mxu2 %v1429_v8  ;;  %615 = vmatpush.msrb.mxu3 %v1430_v9 }
 0x106   :  { %556 = vmatpush.msrb.mxu0 %v1431_v10  ;;  %576 = vmatpush.msrb.mxu1 %v1432_v11 }
 0x107   :  { %596 = vmatpush.msrb.mxu2 %v1433_v12  ;;  %616 = vmatpush.msrb.mxu3 %v1434_v13 }
 0x108   :  { %557 = vmatpush.msrb.mxu0 %v1435_v14  ;;  %577 = vmatpush.msrb.mxu1 %v1436_v15 }
 0x109   :  { %597 = vmatpush.msrb.mxu2 %v1437_v16  ;;  %617 = vmatpush.msrb.mxu3 %v1438_v17 }
 0x165   :  { %v329_v18 = vpop.f32.mrf.mxu1  ;;  %v309_v24 = vpop.f32.mrf.mxu0 }
 0x166   :  { %v376_v19 = vrot.slane %v329_v18, 7 }
 0x168   :  { %v379_v26 = vsel %vm251_vm0, %v309_v24, %v376_v19 }
 0x16c   :  { %v349_v20 = vpop.f32.mrf.mxu2  ;;  %v369_v21 = vpop.f32.mrf.mxu3 }
 0x16d   :  { %v377_v22 = vrot.slane %v349_v20, 6  ;;  %v378_v23 = vrot.slane %v369_v21, 5 }
 0x16f   :  { %v380_v27 = vsel %vm253_vm1, %v377_v22, %v378_v23 }
 0x170   :  { %v381_v28 = vsel %vm255_vm2, %v379_v26, %v380_v27  ;;  %v695_v27 = vld [vmem:[#allocation7 + $0x78] sm:$0xff] }
 0x171   :  { %v383_v29 = vadd.f32 %v381_v28, %v79_v25  ;;  %v694_v28 = vld [vmem:[#allocation7 + $0x70] sm:$0xff] }
 0x173   :  { %v776_v30 = vmul.f32 -1.442695, %v383_v29  ;;  %v404_v35 = vrot.slane %v383_v29, 3  ;;  %v693_v29 = vld [vmem:[#allocation7 + $0x68] sm:$0xff] }
 0x175   :  { %801 = vpow2.f32 %v776_v30  ;;  %v692_v30 = vld [vmem:[#allocation7 + $0x60] sm:$0xff] }
 0x17b   :  { %v802_v31 = vpop.eup %801 }
 0x17c   :  { %v387_v32 = vadd.f32 1.0, %v802_v31  ;;  %v691_v31 = vld [vmem:[#allocation7 + $0x58] sm:$0xff] }
 0x17e   :  { %803 = vrcp.f32 %v387_v32  ;;  %v399_v37 = vand.u32 2147483648, %v387_v32  ;;  %v397_v39 = vand.u32 2147483647, %v387_v32  ;;  %vm393_vm8 = vweird.f32 %v387_v32 }
 0x17f   :  { %805 = vtanh.f32 %v404_v35 }
 0x180   :  { %v400_v41 = vor.u32 1.1754944e-38, %v399_v37  ;;  %vm398_vm10 = vcmp.eq.f32.partialorder %v397_v39, 8.507059e+37 }
 0x184   :  { %v804_v33 = vpop.eup %803 }
 0x185   :  { %v389_v34 = vmul.f32 %v804_v33, %v387_v32  ;;  %vm394_vm7 = vweird.f32 %v804_v33  ;;  %v806_v45 = vpop.eup %805  ;;  %v690_v32 = vld [vmem:[#allocation7 + $0x50] sm:$0xff] }
 0x186   :  { %vm395_vm9 = vmor %vm393_vm8, %vm394_vm7 }
 0x187   :  { %v390_v36 = vsub.f32 1.0, %v389_v34  ;;  %v688_v34 = vld [vmem:[#allocation7 + $0x40] sm:$0xff] }
 0x189   :  { %v391_v38 = vmul.f32 %v804_v33, %v390_v36 }
 0x18b   :  { %v392_v40 = vadd.f32 %v804_v33, %v391_v38  ;;  %v687_v38 = vld [vmem:[#allocation7 + $0x38] sm:$0xff] }
 0x18d   :  { %v396_v42 = vsel %vm395_vm9, %v804_v33, %v392_v40 }
 0x18e   :  { %v401_v43 = vsel %vm398_vm10, %v400_v41, %v396_v42  ;;  %v99_v42 = vld [vmem:[%s98_s23] ss:$8 sm:$0xf] }
 0x18f   :  { %v408_v44 = vrot.slane %v401_v43, 1  ;;  %v411_v49 = vmul.f32 %v806_v45, %v401_v43  ;;  %v414_v61 = vrot.slane %v401_v43, 2  ;;  %v686_v43 = vld [vmem:[#allocation7 + $0x30] sm:$0xff] }
 0x191   :  { %v410_v48 = vmul.f32 %v408_v44, %v1282_v63 }
 0x193   :  { %v412_v52 = vadd.f32 %v411_v49, %v410_v48  ;;  %v685_v49 = vld [vmem:[#allocation7 + $0x28] sm:$0xff] }
 0x195   :  { %807 = vtanh.f32 %v412_v52 }
 0x19b   :  { %v808_v50 = vpop.eup %807 }
 0x19c   :  { %v416_v51 = vmul.f32 %v808_v50, %v414_v61  ;;  %v684_v61 = vld [vmem:[#allocation7 + $0x20] sm:$0xff] }
 0x19e   :  { %433 = vmatmul.f32.vlgmr.msra.gmra.mxu0 %v416_v51  ;;  %453 = vmatmul.f32.vlgmr.msra.gmra.mxu1 %v416_v51  ;;  %v668_v22 = vperm.slane %v416_v51, 0 }
 0x19f   :  { %473 = vmatmul.f32.vlgmr.msra.gmra.mxu2 %v416_v51  ;;  %493 = vmatmul.f32.vlgmr.msra.gmra.mxu3 %v416_v51  ;;  %v683_v51 = vld [vmem:[#allocation7 + $0x18] sm:$0xff] }
 0x1a0   :  { %v676_v25 = vsel %vm251_vm0, %v1285_v62, %v668_v22  ;;  %698 = vmatpush.msra.mxu0 %v695_v27  ;;  %v689_v62 = vld [vmem:[#allocation7 + $0x48] sm:$0xff] }
 0x1a2   :  { %699 = vmatpush.msra.mxu0 %v694_v28 }
 0x1a4   :  { %700 = vmatpush.msra.mxu0 %v693_v29 }
 0x1a6   :  { %701 = vmatpush.msra.mxu0 %v692_v30 }
 0x1a8   :  { %702 = vmatpush.msra.mxu0 %v691_v31 }
 0x1aa   :  { %703 = vmatpush.msra.mxu0 %v690_v32 }
 0x1ac   :  { %704 = vmatpush.msra.mxu0 %v689_v62 }
 0x1ae   :  { %705 = vmatpush.msra.mxu0 %v688_v34 }
 0x1b0   :  { %706 = vmatpush.msra.mxu0 %v687_v38 }
 0x1b2   :  { %707 = vmatpush.msra.mxu0 %v686_v43 }
 0x1b4   :  { %708 = vmatpush.msra.mxu0 %v685_v49 }
 0x1b6   :  { %709 = vmatpush.msra.mxu0 %v684_v61 }
 0x1b8   :  { %710 = vmatpush.msra.mxu0 %v683_v51 }
 0x21b   :  { %v454_v60 = vpop.f32.mrf.mxu1  ;;  %v434_v46 = vpop.f32.mrf.mxu0 }
 0x21c   :  { %v501_v54 = vrot.slane %v454_v60, 7  ;;  %v682_v60 = vld [vmem:[#allocation7 + $0x10] sm:$0xff] }
 0x21d   :  { %711 = vmatpush.msra.mxu0 %v682_v60 }
 0x21e   :  { %v504_v63 = vsel %vm251_vm0, %v434_v46, %v501_v54  ;;  %v681_v54 = vld [vmem:[#allocation7 + $0x8] sm:$0xff] }
 0x21f   :  { %712 = vmatpush.msra.mxu0 %v681_v54 }
 0x222   :  { %v474_v55 = vpop.f32.mrf.mxu2  ;;  %v494_v56 = vpop.f32.mrf.mxu3 }
 0x223   :  { %v502_v47 = vrot.slane %v474_v55, 6  ;;  %v503_v58 = vrot.slane %v494_v56, 5  ;;  %v680_v55 = vld [vmem:[#allocation7] sm:$0xff] }
 0x224   :  { %713 = vmatpush.msra.mxu0 %v680_v55 }
 0x225   :  { %v505_v53 = vsel %vm253_vm1, %v502_v47, %v503_v58 }
 0x226   :  { %v506_v57 = vsel %vm255_vm2, %v504_v63, %v505_v53 }
 0x227   :  { %v508_v0 = vadd.f32 %v506_v57, %v89_v59 }
 0x229   :  { %v777_v1 = vmul.f32 -1.442695, %v508_v0  ;;  %v529_v6 = vrot.slane %v508_v0, 3 }
 0x22b   :  { %809 = vpow2.f32 %v777_v1 }
 0x231   :  { %v810_v2 = vpop.eup %809 }
 0x232   :  { %v512_v3 = vadd.f32 1.0, %v810_v2 }
 0x234   :  { %811 = vrcp.f32 %v512_v3  ;;  %v524_v8 = vand.u32 2147483648, %v512_v3  ;;  %v522_v10 = vand.u32 2147483647, %v512_v3  ;;  %vm518_vm12 = vweird.f32 %v512_v3 }
 0x235   :  { %813 = vtanh.f32 %v529_v6 }
 0x236   :  { %v525_v12 = vor.u32 1.1754944e-38, %v524_v8  ;;  %vm523_vm14 = vcmp.eq.f32.partialorder %v522_v10, 8.507059e+37 }
 0x23a   :  { %v812_v4 = vpop.eup %811 }
 0x23b   :  { %v514_v5 = vmul.f32 %v812_v4, %v512_v3  ;;  %vm519_vm11 = vweird.f32 %v812_v4  ;;  %v814_v16 = vpop.eup %813 }
 0x23c   :  { %vm520_vm13 = vmor %vm518_vm12, %vm519_vm11 }
 0x23d   :  { %v515_v7 = vsub.f32 1.0, %v514_v5 }
 0x23f   :  { %v516_v9 = vmul.f32 %v812_v4, %v515_v7 }
 0x241   :  { %v517_v11 = vadd.f32 %v812_v4, %v516_v9 }
 0x243   :  { %v521_v13 = vsel %vm520_vm13, %v812_v4, %v517_v11 }
 0x244   :  { %v526_v14 = vsel %vm523_vm14, %v525_v12, %v521_v13 }
 0x245   :  { %v533_v15 = vrot.slane %v526_v14, 1  ;;  %v536_v18 = vmul.f32 %v814_v16, %v526_v14  ;;  %v539_v20 = vrot.slane %v526_v14, 2 }
 0x247   :  { %v535_v17 = vmul.f32 %v533_v15, %v412_v52  ;;  %v792_v15 = vld [vmem:[#allocation7 + $0x80] ss:$0 sm:$0xff] }
 0x249   :  { %v1362_v19 = vadd.f32 %v536_v18, %v535_v17 }
 0x24b   :  { %815 = vtanh.f32 %v1362_v19 }
 0x251   :  { %v816_v21 = vpop.eup %815 }
 0x252   :  { %v541_v23 = vmul.f32 %v816_v21, %v539_v20 }
 0x254   :  { %558 = vmatmul.f32.vlgmr.msrb.gmra.mxu0 %v541_v23  ;;  %578 = vmatmul.f32.vlgmr.msrb.gmra.mxu1 %v541_v23  ;;  %v671_v24 = vperm.slane %v541_v23, 0 }
 0x255   :  { %598 = vmatmul.f32.vlgmr.msrb.gmra.mxu2 %v541_v23  ;;  %618 = vmatmul.f32.vlgmr.msrb.gmra.mxu3 %v541_v23 }
 0x256   :  { %v1368_v26 = vsel %vm255_vm2, %v676_v25, %v671_v24 }
 0x2d1   :  { %v579_v33 = vpop.f32.mrf.mxu1  ;;  %v559_v41 = vpop.f32.mrf.mxu0 }
 0x2d2   :  { %v626_v35 = vrot.slane %v579_v33, 7 }
 0x2d4   :  { %v629_v44 = vsel %vm251_vm0, %v559_v41, %v626_v35 }
 0x2d8   :  { %v599_v36 = vpop.f32.mrf.mxu2  ;;  %v619_v37 = vpop.f32.mrf.mxu3 }
 0x2d9   :  { %v627_v39 = vrot.slane %v599_v36, 6  ;;  %v628_v40 = vrot.slane %v619_v37, 5 }
 0x2db   :  { %v630_v45 = vsel %vm253_vm1, %v627_v39, %v628_v40 }
 0x2dc   :  { %v631_v48 = vsel %vm255_vm2, %v629_v44, %v630_v45 }
 0x2dd   :  { %v633_v52 = vadd.f32 %v631_v48, %v99_v42 }
 0x2df   :  { %v778_v50 = vmul.f32 -1.442695, %v633_v52  ;;  %v654_v59 = vrot.slane %v633_v52, 3 }
 0x2e1   :  { %817 = vpow2.f32 %v778_v50 }
 0x2e7   :  { %v818_v56 = vpop.eup %817 }
 0x2e8   :  { %v637_v47 = vadd.f32 1.0, %v818_v56 }
 0x2ea   :  { %819 = vrcp.f32 %v637_v47  ;;  %v649_v53 = vand.u32 2147483648, %v637_v47  ;;  %v647_v0 = vand.u32 2147483647, %v637_v47  ;;  %vm643_vm0 = vweird.f32 %v637_v47 }
 0x2eb   :  { %821 = vtanh.f32 %v654_v59 }
 0x2ec   :  { %v650_v2 = vor.u32 1.1754944e-38, %v649_v53  ;;  %vm648_vm2 = vcmp.eq.f32.partialorder %v647_v0, 8.507059e+37 }
 0x2f0   :  { %v820_v58 = vpop.eup %819 }
 0x2f1   :  { %v639_v46 = vmul.f32 %v820_v58, %v637_v47  ;;  %vm644_vm15 = vweird.f32 %v820_v58  ;;  %v822_v6 = vpop.eup %821 }
 0x2f2   :  { %vm645_vm1 = vmor %vm643_vm0, %vm644_vm15 }
 0x2f3   :  { %v640_v63 = vsub.f32 1.0, %v639_v46 }
 0x2f5   :  { %v641_v57 = vmul.f32 %v820_v58, %v640_v63 }
 0x2f7   :  { %v642_v1 = vadd.f32 %v820_v58, %v641_v57 }
 0x2f9   :  { %v646_v3 = vsel %vm645_vm1, %v820_v58, %v642_v1 }
 0x2fa   :  { %v651_v4 = vsel %vm648_vm2, %v650_v2, %v646_v3 }
 0x2fb   :  { %v658_v5 = vrot.slane %v651_v4, 1  ;;  %v661_v8 = vmul.f32 %v822_v6, %v651_v4  ;;  %v664_v10 = vrot.slane %v651_v4, 2 }
 0x2fd   :  { %v660_v7 = vmul.f32 %v658_v5, %v1362_v19 }
 0x2ff   :  { %v662_v9 = vadd.f32 %v661_v8, %v660_v7 }
 0x301   :  { %823 = vtanh.f32 %v662_v9 }
 0x307   :  { %v824_v11 = vpop.eup %823 }
 0x308   :  { %v666_v12 = vmul.f32 %v824_v11, %v664_v10 }
 0x30a   :  { %v674_v13 = vperm.slane %v666_v12, 0 }
 0x30c   :  { %v679_v14 = vsel %vm678_vm3, %v1368_v26, %v674_v13 }
 0x30d   :  { %714 = vmatmul.f32.vlgmr.msra.gmra.mxu0 %v679_v14 }
 0x38a   :  { %v715_v16 = vpop.f32.mrf.mxu0 }
 0x38b   :  { %v716_v17 = vadd.f32 %v792_v15, %v715_v16 }
 0x38d   :  { %v719_v18 = vsel %vm718_vm4, %v716_v17, -inf }
 0x38e   :  { %720 = vmax.xlane.f32.xlu0 %v719_v18 }
 0x401   :  { %v721_v20 = vpop.xlane.xlu0 %720 }
 0x402   :  { %v722_v21 = vsub.f32 %v716_v17, %v721_v20 }
 0x404   :  { %v723_v19 = vmul.f32 1.442695, %v722_v21 }
 0x406   :  { %825 = vpow2.f32 %v723_v19 }
 0x40c   :  { %v826_v22 = vpop.eup %825 }
 0x40d   :  { %v725_v23 = vsel %vm718_vm4, %v826_v22, 0.0 }
 0x40e   :  { %726 = vadd.xlane.f32.xlu0 %v725_v23 }
 0x481   :  { %v727_v24 = vpop.xlane.xlu0 %726 }
 0x482   :  { %827 = vlog2.f32 %v727_v24 }
 0x488   :  { %v828_v25 = vpop.eup %827 }
 0x489   :  { %v729_v27 = vmul.f32 0.6931472, %v828_v25 }
 0x48b   :  { %v730_v26 = vadd.f32 %v729_v27, %v721_v20 }
 0x48d   :  { %v731_v28 = vsub.f32 %v716_v17, %v730_v26 }
 0x48f   :  { %732 = vst [vmem:[#allocation9] sm:$0xf] %v731_v28 }
 0x490   :  { %743 = dma.vmem_to_hbm [thread:$0]  %s739_s25, 64, %s741_s27, [#allocation4]  }
 0x491   :  { %919 = dma.done.wait [#allocation4], 64  }
 0x492   :  { %920 = vsyncadd [#allocation4], 4294967232 }
 0x493   :  { %748 = vsyncpa [#allocation3], 1 }
 0x494   :  { %749 = vsyncpa [#allocation8], 1 }
 0x495   :  { %750 = vsyncpa [#allocation4], 1 }
 0x496   :  { %751 = vsyncpa [#allocation5], 1 }

</bundles_post_ra>
